<compile_context>
chip_gen: v6e
topology: v6e:2x2x1
jax: 0.10.0
libtpu: 0.0.40
codegen_flags: <defaults>
</compile_context>

<pallas_src>
import functools

import jax
import jax.numpy as jnp
from jax.experimental import pallas as pl
from jax.experimental.pallas import tpu as pltpu

BN_EPS = 1e-5
H = 128                         # lane-padded width for all hidden blocks (true dims <= 16)
BT_MAX = 1024                   # batch-tile rows per grid step (512-2048 sweet spot)
VMEM_LIMIT = 32 * 1024 * 1024   # explicit scoped-VMEM budget; safe on v5e/v6e/v7x


def _round_up(n, m):
    return (n + m - 1) // m * m


def _offsets(Dp):
    # Static, 8-aligned row offsets into the packed parameter slab.
    r_w2 = Dp
    r_w3 = Dp + H
    r_w4 = Dp + 2 * H
    r_vec = Dp + 3 * H
    return r_w2, r_w3, r_w4, r_vec


def _elu(v):
    # ELU(alpha=1). expm1 is a single EUP op, exact at 0 (keeps padded lanes 0).
    return jnp.where(v > 0, v, jnp.expm1(v))


def _mask_rows(h, tile_idx, Bt, B):
    # Zero padded batch rows so they don't contaminate BN statistics.
    # Compiles to nothing when B is a multiple of the tile size.
    if B % Bt == 0:
        return h
    row = jax.lax.broadcasted_iota(jnp.int32, h.shape, 0) + tile_idx * Bt
    return jnp.where(row < B, h, 0.0)


def _accum_stats(s_ref, h, Bt):
    # Per-feature sum / sum-of-squares as ones-row matmuls: uses the otherwise
    # idle MXU instead of VPU/XLU batch-axis reductions, and the result is
    # already replicated across 8 sublanes.
    ones = jnp.ones((8, Bt), jnp.float32)
    s_ref[0:8, :] += jnp.dot(ones, h, preferred_element_type=jnp.float32)
    s_ref[8:16, :] += jnp.dot(ones, h * h, preferred_element_type=jnp.float32)


def _encode_to_h3(x_ref, p_ref, aux_ref, Dp):
    # x@W1 -> BN1 (folded scale/shift) -> ELU -> @W2 + b2 -> ELU -> @W3
    # (b1 / b3 omitted: exactly cancelled by training-mode BN mean subtraction)
    r_w2, r_w3, _, r_vec = _offsets(Dp)
    x = x_ref[...]                                   # (Bt, Dp)
    w1 = p_ref[0:Dp, :]                              # (Dp, 128)  true (D, 16)
    w2 = p_ref[r_w2:r_w2 + H, :]                     # (128, 128) true (16, 8)
    w3 = p_ref[r_w3:r_w3 + H, :]                     # (128, 128) true (8, 16)
    b2 = p_ref[r_vec + 0:r_vec + 1, :]               # (1, 128)
    scale1 = aux_ref[0:1, :]
    shift1 = aux_ref[1:2, :]
    h1 = jnp.dot(x, w1, preferred_element_type=jnp.float32)
    a1 = _elu(h1 * scale1 + shift1)
    a2 = _elu(jnp.dot(a1, w2, preferred_element_type=jnp.float32) + b2)
    return jnp.dot(a2, w3, preferred_element_type=jnp.float32)


# ----------------------------- kernels ------------------------------------


def stats1_kernel(x_ref, p_ref, s_ref, *, Dp, Bt, B):
    i = pl.program_id(0)

    @pl.when(i == 0)
    def _():
        s_ref[...] = jnp.zeros_like(s_ref)

    h1 = jnp.dot(x_ref[...], p_ref[0:Dp, :], preferred_element_type=jnp.float32)
    _accum_stats(s_ref, _mask_rows(h1, i, Bt, B), Bt)


def stats2_kernel(x_ref, p_ref, aux_ref, s_ref, *, Dp, Bt, B):
    i = pl.program_id(0)

    @pl.when(i == 0)
    def _():
        s_ref[...] = jnp.zeros_like(s_ref)

    h3 = _encode_to_h3(x_ref, p_ref, aux_ref, Dp)
    _accum_stats(s_ref, _mask_rows(h3, i, Bt, B), Bt)


def final_kernel(x_ref, p_ref, aux_ref, o_ref, *, Dp):
    _, _, r_w4, r_vec = _offsets(Dp)
    h3 = _encode_to_h3(x_ref, p_ref, aux_ref, Dp)
    scale2 = aux_ref[2:3, :]
    shift2 = aux_ref[3:4, :]
    a3 = _elu(h3 * scale2 + shift2)
    w4 = p_ref[r_w4:r_w4 + H, :]                     # (128, 128) true (16, D)
    b4 = p_ref[r_vec + 1:r_vec + 2, :]
    out = _elu(jnp.dot(a3, w4, preferred_element_type=jnp.float32) + b4)
    o_ref[...] = out.astype(o_ref.dtype)             # lane-dense (Bt, 128) store


# ----------------------------- packing / wrapper ---------------------------


def pack_params(params, input_dim):
    """Pack parameters into one zero-padded (Dp + 3*128 + 8, 128) f32 slab.

    Weights are stored (in_features, out_features) so kernels compute
    y = x @ W (+ b) (== PyTorch x @ W.T + b). Zero padding is exact through
    Linear, training-mode BN and ELU. b1/b3 are NOT packed (they cancel under
    training-mode BatchNorm). gamma/beta rows are only read by the wrapper to
    fold BN into per-feature scale/shift.
    """
    D = input_dim
    assert D <= H, "packing scheme assumes input_dim <= 128"
    Dp = _round_up(max(D, 8), 8)
    r_w2, r_w3, r_w4, r_vec = _offsets(Dp)
    slab = jnp.zeros((r_vec + 8, H), jnp.float32)
    slab = slab.at[0:D, 0:16].set(params["w1"])
    slab = slab.at[r_w2:r_w2 + 16, 0:8].set(params["w2"])
    slab = slab.at[r_w3:r_w3 + 8, 0:16].set(params["w3"])
    slab = slab.at[r_w4:r_w4 + 16, 0:D].set(params["w4"])
    slab = slab.at[r_vec + 0, 0:8].set(params["b2"].reshape(-1))
    slab = slab.at[r_vec + 1, 0:D].set(params["b4"].reshape(-1))
    slab = slab.at[r_vec + 2, 0:16].set(params["g1"].reshape(-1))
    slab = slab.at[r_vec + 3, 0:16].set(params["be1"].reshape(-1))
    slab = slab.at[r_vec + 4, 0:16].set(params["g2"].reshape(-1))
    slab = slab.at[r_vec + 5, 0:16].set(params["be2"].reshape(-1))
    return slab


def _bn_fold(stats, gamma, beta, n):
    # Training-mode BN folded to y = h*scale + shift, computed once per batch.
    mean = stats[0] / n
    var = jnp.maximum(stats[8] / n - mean * mean, 0.0)
    scale = gamma * jax.lax.rsqrt(var + BN_EPS)
    shift = beta - mean * scale
    return scale, shift


def custom_ae_forward(x, slab, *, block_rows=BT_MAX):
    B, D = x.shape
    Dp = _round_up(max(D, 8), 8)
    _, _, _, r_vec = _offsets(Dp)
    assert slab.shape == (r_vec + 8, H)

    Bt = min(block_rows, _round_up(B, 8))           # batch-tile rows (multiple of 8)
    Bp = _round_up(B, Bt)                           # padded batch rows
    n_tiles = Bp // Bt

    x_p = x
    if (Bp, Dp) != (B, D):
        x_p = jnp.pad(x, ((0, Bp - B), (0, Dp - D)))

    x_spec = pl.BlockSpec((Bt, Dp), lambda i: (i, 0))         # pipelined per tile
    slab_spec = pl.BlockSpec(slab.shape, lambda i: (0, 0))    # DMA'd once, resident
    aux_spec = pl.BlockSpec((8, H), lambda i: (0, 0))
    stats_spec = pl.BlockSpec((16, H), lambda i: (0, 0))      # resident accumulator
    stats_shape = jax.ShapeDtypeStruct((16, H), jnp.float32)

    arb = pltpu.CompilerParams(dimension_semantics=("arbitrary",),
                               vmem_limit_bytes=VMEM_LIMIT)
    par = pltpu.CompilerParams(dimension_semantics=("parallel",),
                               vmem_limit_bytes=VMEM_LIMIT)

    # ---- pass 1: BN1 full-batch statistics --------------------------------
    stats1 = pl.pallas_call(
        functools.partial(stats1_kernel, Dp=Dp, Bt=Bt, B=B),
        out_shape=stats_shape,
        grid=(n_tiles,),
        in_specs=[x_spec, slab_spec],
        out_specs=stats_spec,
        compiler_params=arb,
    )(x_p, slab)

    g1, be1 = slab[r_vec + 2], slab[r_vec + 3]
    g2, be2 = slab[r_vec + 4], slab[r_vec + 5]
    scale1, shift1 = _bn_fold(stats1, g1, be1, B)
    aux = jnp.zeros((8, H), jnp.float32).at[0].set(scale1).at[1].set(shift1)

    # ---- pass 2: BN2 full-batch statistics --------------------------------
    stats2 = pl.pallas_call(
        functools.partial(stats2_kernel, Dp=Dp, Bt=Bt, B=B),
        out_shape=stats_shape,
        grid=(n_tiles,),
        in_specs=[x_spec, slab_spec, aux_spec],
        out_specs=stats_spec,
        compiler_params=arb,
    )(x_p, slab, aux)

    scale2, shift2 = _bn_fold(stats2, g2, be2, B)
    aux = aux.at[2].set(scale2).at[3].set(shift2)

    # ---- pass 3: full forward, batch-parallel, lane-dense output ----------
    out_p = pl.pallas_call(
        functools.partial(final_kernel, Dp=Dp),
        out_shape=jax.ShapeDtypeStruct((Bp, H), jnp.float32),
        grid=(n_tiles,),
        in_specs=[x_spec, slab_spec, aux_spec],
        out_specs=pl.BlockSpec((Bt, H), lambda i: (i, 0)),
        compiler_params=par,
    )(x_p, slab, aux)

    return out_p[:B, :D].astype(x.dtype)


# ----------------------------- reference / test -----------------------------


def init_params(key, input_dim):
    """PyTorch-like Linear init (uniform(+-1/sqrt(fan_in))); BN gamma=1, beta=0."""
    def linear(k, fan_in, fan_out):
        kw, kb = jax.random.split(k)
        bound = 1.0 / jnp.sqrt(float(fan_in))
        w = jax.random.uniform(kw, (fan_in, fan_out), jnp.float32, -bound, bound)
        b = jax.random.uniform(kb, (1, fan_out), jnp.float32, -bound, bound)
        return w, b

    k1, k2, k3, k4 = jax.random.split(key, 4)
    w1, b1 = linear(k1, input_dim, 16)
    w2, b2 = linear(k2, 16, 8)
    w3, b3 = linear(k3, 8, 16)
    w4, b4 = linear(k4, 16, input_dim)
    return {
        "w1": w1, "b1": b1,
        "g1": jnp.ones((1, 16), jnp.float32), "be1": jnp.zeros((1, 16), jnp.float32),
        "w2": w2, "b2": b2,
        "w3": w3, "b3": b3,
        "g2": jnp.ones((1, 16), jnp.float32), "be2": jnp.zeros((1, 16), jnp.float32),
        "w4": w4, "b4": b4,
    }


def _reference_forward(x, p):
    # pure-JAX reference (PyTorch training-mode forward semantics, biases kept)
    def bn(v, g, b):
        m = jnp.mean(v, axis=0, keepdims=True)
        var = jnp.mean((v - m) ** 2, axis=0, keepdims=True)
        return (v - m) / jnp.sqrt(var + BN_EPS) * g + b

    def elu(v):
        return jnp.where(v > 0, v, jnp.exp(v) - 1.0)

    h = x @ p["w1"] + p["b1"]
    h = elu(bn(h, p["g1"], p["be1"]))
    h = elu(h @ p["w2"] + p["b2"])
    h = h @ p["w3"] + p["b3"]
    h = elu(bn(h, p["g2"], p["be2"]))
    return elu(h @ p["w4"] + p["b4"])


if __name__ == "__main__":
    INPUT_DIM = 32
    BATCH = 8

    key = jax.random.PRNGKey(0)
    kx, kp, kx2 = jax.random.split(key, 3)
    params = init_params(kp, INPUT_DIM)
    slab = pack_params(params, INPUT_DIM)        # one-time host-side packing

    # small single-tile case
    x = jax.random.normal(kx, (BATCH, INPUT_DIM), jnp.float32)
    out = jax.block_until_ready(custom_ae_forward(x, slab))
    ref = _reference_forward(x, params)
    assert out.shape == (BATCH, INPUT_DIM)
    assert jnp.allclose(out, ref, atol=1e-4, rtol=1e-4)

    # multi-tile grid path with a ragged last tile (3 tiles of 8 rows, B=20)
    x2 = jax.random.normal(kx2, (20, INPUT_DIM), jnp.float32)
    out2 = jax.block_until_ready(custom_ae_forward(x2, slab, block_rows=8))
    ref2 = _reference_forward(x2, params)
    assert out2.shape == (20, INPUT_DIM)
    assert jnp.allclose(out2, ref2, atol=1e-4, rtol=1e-4)

    print("KERNEL_OK")
</pallas_src>

<mosaic_0001>
module attributes {stable_mosaic.version = 11 : i64} {
  func.func @stats1_kernel(%arg0: i32, %arg1: memref<8x32xf32, #tpu.memory_space<vmem>>, %arg2: memref<424x128xf32, #tpu.memory_space<vmem>>, %arg3: memref<16x128xf32, #tpu.memory_space<vmem>>) attributes {dimension_semantics = [#tpu.dimension_semantics<arbitrary>], iteration_bounds = array<i64: 1>, scalar_prefetch = 0 : i64, scratch_operands = 0 : i64, tpu.core_type = #tpu.core_type<tc>, window_params = [{transform_indices = @transform_0, window_bounds = array<i64: 8, 32>}, {pipeline_mode = #tpu.pipeline_mode<synchronous>, transform_indices = @transform_1, window_bounds = array<i64: 424, 128>}, {pipeline_mode = #tpu.pipeline_mode<synchronous>, transform_indices = @transform_2, window_bounds = array<i64: 16, 128>}]} {
    %c0_i32 = arith.constant 0 : i32
    %0 = arith.cmpi eq, %arg0, %c0_i32 : i32
    %1 = arith.extui %0 : i1 to i32
    %c0_i32_0 = arith.constant 0 : i32
    %2 = arith.cmpi ne, %1, %c0_i32_0 : i32
    scf.if %2 {
      %cst_14 = arith.constant 0.000000e+00 : f32
      %16 = vector.broadcast %cst_14 : f32 to vector<16x128xf32>
      %c0_15 = arith.constant 0 : index
      %c0_16 = arith.constant 0 : index
      %17 = vector.load %arg3[%c0_15, %c0_16] : memref<16x128xf32, #tpu.memory_space<vmem>>, vector<16x128xf32>
      tpu.vector_store %arg3[%c0_15, %c0_16], %16 {strides = array<i32>} : memref<16x128xf32, #tpu.memory_space<vmem>>, vector<16x128xf32>,
    } else {
    }
    %c0 = arith.constant 0 : index
    %c0_1 = arith.constant 0 : index
    %3 = vector.load %arg1[%c0, %c0_1] : memref<8x32xf32, #tpu.memory_space<vmem>>, vector<8x32xf32>
    %c0_2 = arith.constant 0 : index
    %c0_3 = arith.constant 0 : index
    %4 = vector.load %arg2[%c0_2, %c0_3] : memref<424x128xf32, #tpu.memory_space<vmem>>, vector<32x128xf32>
    %cst = arith.constant dense<0.000000e+00> : vector<8x128xf32>
    %5 = tpu.matmul %3, %4, %cst {dimension_numbers = #tpu.dot_dimension_numbers<[1], [0], [0], [1], [0, 0, 1, 1], [], []>} : vector<8x32xf32>, vector<32x128xf32>, vector<8x128xf32> -> vector<8x128xf32>
    %cst_4 = arith.constant 1.000000e+00 : f32
    %6 = vector.broadcast %cst_4 : f32 to vector<8x8xf32>
    %c0_5 = arith.constant 0 : index
    %c0_6 = arith.constant 0 : index
    %7 = vector.load %arg3[%c0_5, %c0_6] : memref<16x128xf32, #tpu.memory_space<vmem>>, vector<8x128xf32>
    %cst_7 = arith.constant dense<0.000000e+00> : vector<8x128xf32>
    %8 = tpu.matmul %6, %5, %cst_7 {dimension_numbers = #tpu.dot_dimension_numbers<[1], [0], [0], [1], [0, 0, 1, 1], [], []>} : vector<8x8xf32>, vector<8x128xf32>, vector<8x128xf32> -> vector<8x128xf32>
    %9 = arith.addf %7, %8 : vector<8x128xf32>
    %c0_8 = arith.constant 0 : index
    %c0_9 = arith.constant 0 : index
    %10 = vector.load %arg3[%c0_8, %c0_9] : memref<16x128xf32, #tpu.memory_space<vmem>>, vector<8x128xf32>
    tpu.vector_store %arg3[%c0_8, %c0_9], %9 {strides = array<i32>} : memref<16x128xf32, #tpu.memory_space<vmem>>, vector<8x128xf32>,
    %c8 = arith.constant 8 : index
    %c0_10 = arith.constant 0 : index
    %11 = vector.load %arg3[%c8, %c0_10] : memref<16x128xf32, #tpu.memory_space<vmem>>, vector<8x128xf32>
    %12 = arith.mulf %5, %5 : vector<8x128xf32>
    %cst_11 = arith.constant dense<0.000000e+00> : vector<8x128xf32>
    %13 = tpu.matmul %6, %12, %cst_11 {dimension_numbers = #tpu.dot_dimension_numbers<[1], [0], [0], [1], [0, 0, 1, 1], [], []>} : vector<8x8xf32>, vector<8x128xf32>, vector<8x128xf32> -> vector<8x128xf32>
    %14 = arith.addf %11, %13 : vector<8x128xf32>
    %c8_12 = arith.constant 8 : index
    %c0_13 = arith.constant 0 : index
    %15 = vector.load %arg3[%c8_12, %c0_13] : memref<16x128xf32, #tpu.memory_space<vmem>>, vector<8x128xf32>
    tpu.vector_store %arg3[%c8_12, %c0_13], %14 {strides = array<i32>} : memref<16x128xf32, #tpu.memory_space<vmem>>, vector<8x128xf32>,
    return
  }
  func.func @transform_0(%arg0: i32) -> (i32, i32) {
    %c0_i32 = arith.constant 0 : i32
    %c0_i32_0 = arith.constant 0 : i32
    return %arg0, %c0_i32 : i32, i32
  }
  func.func @transform_1(%arg0: i32) -> (i32, i32) {
    %c0_i32 = arith.constant 0 : i32
    %c0_i32_0 = arith.constant 0 : i32
    %c0_i32_1 = arith.constant 0 : i32
    return %c0_i32, %c0_i32_0 : i32, i32
  }
  func.func @transform_2(%arg0: i32) -> (i32, i32) {
    %c0_i32 = arith.constant 0 : i32
    %c0_i32_0 = arith.constant 0 : i32
    %c0_i32_1 = arith.constant 0 : i32
    return %c0_i32, %c0_i32_0 : i32, i32
  }
}

</mosaic_0001>

<bundles_post_ra>
// kernel: tpu_custom_call.1
= control target key start
LH: loop header
LB: loop body
LE: loop exit
PB: predicated region body
PF: predicated region fallthrough
CT: control target
= control target key end

     0   :  { %7 = vsyncpa [#allocation3], 0  ;;  %s440_s0 = inlined_call_operand.hbm [shape: f32[8,32], index: 0, kind: input, shape index: {}]   ;;  %s441_s1 = inlined_call_operand.hbm [shape: f32[424,128], index: 1, kind: input, shape index: {}]   ;;  %s442_s2 = inlined_call_operand.hbm [shape: f32[16,128], index: 2, kind: output, shape index: {}]  }
   0x1   :  { %8 = vsyncpa [#allocation6], 0 }
   0x2   :  { %9 = vsyncpa [#allocation4], 0  ;;  %s399_s9 = smov [#allocation2]   ;;  %s400_s11 = smov [#allocation5]  }
   0x3   :  { %s16_s10 = sshll.u32 %s399_s9, 4  ;;  %s25_s12 = sshll.u32 %s400_s11, 4  ;;  %s17_s10 = int_to_ptr.vmem [resolvable:$true] %s16_s10  ;;  %s26_s12 = int_to_ptr.vmem [resolvable:$true] %s25_s12 }
   0x4   :  { %s341_s13 = scalar_lea.vmem %s17_s10, 128  ;;  %p346_p1 = scmp.lt.s32.totalorder %s17_s10, %s17_s10 }
   0x5   :  { %p342_p0 = scmp.ne.s32.totalorder %s17_s10, %s341_s13  ;;  %p347_p2 = scmp.lt.s32.totalorder %s341_s13, %s341_s13 }
   0x7   :  { %p348_p3 = por %p347_p2, %p346_p1 }
   0x9   :  { %p349_p4 = pnand %p348_p3, %p342_p0 }
   0xb   :  { %352 = shalt.err (!%p349_p4)
}
   0xc   :  { %19 = dma.hbm_to_vmem [thread:$0]  %s440_s0, 128, %s17_s10, [#allocation3]  }
   0xd   :  { %s361_s16 = scalar_lea.vmem %s26_s12, 6784  ;;  %p366_p6 = scmp.lt.s32.totalorder %s26_s12, %s26_s12 }
   0xe   :  { %p362_p5 = scmp.ne.s32.totalorder %s26_s12, %s361_s16  ;;  %p367_p7 = scmp.lt.s32.totalorder %s361_s16, %s361_s16 }
  0x10   :  { %p368_p8 = por %p367_p7, %p366_p6 }
  0x12   :  { %p369_p9 = pnand %p368_p8, %p362_p5 }
  0x14   :  { %372 = shalt.err (!%p369_p9)
}
  0x15   :  { %s401_s17 = smov 128   ;;  %s402_s18 = smov 8  }
  0x16   :  { %31 = dma.hbm_to_vmem [thread:$0]  %s441_s1, 6784, %s26_s12, [#allocation6], %s401_s17, %s401_s17, %s402_s18  }
  0x17   :  { %393 = dma.done.wait [#allocation3], 128  }
  0x18   :  { %394 = vsyncadd [#allocation3], 4294967168 }
  0x19   :  { %395 = dma.done.wait [#allocation6], 6784  }
  0x1a   :  { %396 = vsyncadd [#allocation6], 4294960512  ;;  %v403_v0 = vmov 0.0   ;;  %vm404_vm0 = vmmov 0   ;;  %v48_v1 = vld [vmem:[#allocation5 + $0x18] sm:$0xff]  ;;  %v47_v2 = vld [vmem:[#allocation5 + $0x10] sm:$0xff] }
  0x1b   :  { %304 = vmatprep.subr.mxu0 %v403_v0  ;;  %312 = vmatprep.mubr.msk.f32.mxu0 %vm404_vm0, %v403_v0  ;;  %v46_v3 = vld [vmem:[#allocation5 + $0x8] sm:$0xff]  ;;  %v45_v4 = vld [vmem:[#allocation5] sm:$0xff]  ;;  %v44_v5 = vld [vmem:[#allocation2] sm:$0xff]  ;;  %vm49_vm1 = vcmask 261120   ;;  %vm124_vm2 = vcmask 64512   ;;  %v405_v9 = vmov 1.0  }
  0x1c   :  { %315 = vmatprep.subr.mxu1 %v403_v0  ;;  %317 = vmatprep.mubr.msk.f32.mxu1 %vm404_vm0, %v403_v0  ;;  %s406_s0 = smov [#allocation7]  }
  0x1d   :  { %305 = vmatpush3.msra.mxu0 %v48_v1  ;;  %s279_s1 = sshll.u32 %s406_s0, 4  ;;  %s280_s1 = int_to_ptr.vmem [resolvable:$true] %s279_s1 }
  0x1e   :  { %306 = vmatprep.subr.mxu0 %v403_v0  ;;  %s373_s21 = scalar_lea.vmem %s280_s1, 256  ;;  %p378_p11 = scmp.lt.s32.totalorder %s280_s1, %s280_s1 }
  0x1f   :  { %307 = vmatpush3.msra.mxu0 %v47_v2  ;;  %p374_p10 = scmp.ne.s32.totalorder %s280_s1, %s373_s21  ;;  %p379_p12 = scmp.lt.s32.totalorder %s373_s21, %s373_s21 }
  0x20   :  { %308 = vmatprep.subr.mxu0 %v403_v0 }
  0x21   :  { %309 = vmatpush3.msra.mxu0 %v46_v3  ;;  %p380_p13 = por %p379_p12, %p378_p11 }
  0x22   :  { %310 = vmatprep.subr.mxu0 %v403_v0 }
  0x23   :  { %311 = vmatpush3.msra.mxu0 %v45_v4  ;;  %p381_p0 = pnand %p380_p13, %p374_p10 }
  0x24   :  { %313 = vmatmul.mubr.msk.f32.vlgmr.msra.gmra.mxu0 %vm49_vm1, %v44_v5 }
  0xe4   :  { %v119_v6 = vpop.f32.mrf.mxu0 }
  0xe5   :  { %v201_v7 = vmul.f32 %v119_v6, %v119_v6  ;;  %316 = vmatpush3.msra.mxu1 %v119_v6 }
  0xe6   :  { %v314_v8 = vpop.f32.mrf.mxu0  ;;  %318 = vmatmul.mubr.msk.f32.vlgmr.msra.gmra.mxu1 %vm124_vm2, %v405_v9  ;;  %320 = vmatprep.subr.mxu1 %v403_v0 }
  0xe7   :  { %321 = vmatpush3.msra.mxu1 %v201_v7  ;;  %322 = vmatprep.mubr.msk.f32.mxu1 %vm404_vm0, %v403_v0 }
  0xea   :  { %323 = vmatmul.mubr.msk.f32.vlgmr.msra.gmra.mxu1 %vm124_vm2, %v405_v9 }
 0x1a6   :  { %v194_v10 = vpop.f32.mrf.mxu1 }
 0x1a7   :  { %199 = vst [vmem:[#allocation7] sm:$0xff] %v194_v10 }
 0x1a8   :  { %v319_v11 = vpop.f32.mrf.mxu1 }
 0x1aa   :  { %v268_v12 = vpop.f32.mrf.mxu1 }
 0x1ab   :  { %273 = vst [vmem:[#allocation7 + $0x8] sm:$0xff] %v268_v12 }
 0x1ac   :  { %v324_v13 = vpop.f32.mrf.mxu1 }
 0x1ad   :  { %384 = shalt.err (!%p381_p0)
}
 0x1ae   :  { %285 = dma.vmem_to_hbm [thread:$0]  %s280_s1, 256, %s442_s2, [#allocation4], %s401_s17, %s401_s17, %s402_s18  }
 0x1af   :  { %397 = dma.done.wait [#allocation4], 256  }
 0x1b0   :  { %398 = vsyncadd [#allocation4], 4294967040 }
 0x1b1   :  { %289 = vsyncpa [#allocation3], 1 }
 0x1b2   :  { %290 = vsyncpa [#allocation6], 1 }
 0x1b3   :  { %291 = vsyncpa [#allocation4], 1 }

</bundles_post_ra>
